<compile_context>
chip_gen: v5e
topology: v5e:2x2
jax: 0.10.0
libtpu: 0.0.40
codegen_flags: <defaults>
</compile_context>

<pallas_src>
import math

import jax
import jax.numpy as jnp
import numpy as np
from jax import lax
from jax.experimental import pallas as pl
from jax.experimental.pallas import tpu as pltpu

_LANE = 128
_MAX_CHUNK = 512
_NEG_PAD = -1e30


def _lovasz_kernel(err_ref, gt_ref, tri_ref, out_ref):
    """Per-image Lovász hinge loss.

    err_ref: (1, C, tk) f32  — hinge errors sorted descending, tail padded -1e30.
    gt_ref:  (1, C, tk) bf16 — 0/1 labels permuted by the same sort (padded 0).
    tri_ref: (tk, tk)   bf16 — upper-triangular (r <= c) cumsum operator.
    out_ref: (1, 1, 128) f32 — per-image loss broadcast across lanes.
    """
    _, C, tk = err_ref.shape
    err = err_ref[0]                                   # (C, tk) f32
    gt_bf = gt_ref[0]                                  # (C, tk) bf16, exact 0/1
    gt = gt_bf.astype(jnp.float32)

    # ---- blocked inclusive cumsum of gt along the flattened pixel order ----
    # Operands are exactly 0/1 so bf16 is bit-exact; accumulation is f32.
    within = jnp.dot(gt_bf, tri_ref[...],
                     preferred_element_type=jnp.float32)          # (C, tk)

    if C > 1:
        # Exclusive carry of per-chunk totals.  Matmul on the (C, 1) totals
        # column, then broadcast-add (cheaper than broadcasting first).
        ci = lax.broadcasted_iota(jnp.int32, (C, C), 0)
        cj = lax.broadcasted_iota(jnp.int32, (C, C), 1)
        lower = (cj < ci).astype(jnp.float32)
        carry = jnp.dot(lower, within[:, tk - 1:tk],
                        preferred_element_type=jnp.float32)       # (C, 1)
        cum = within + carry                                      # (C, tk)
    else:
        cum = within

    # ---- Jaccard / lovasz_grad (elementwise, VPU) ----
    gts = jnp.sum(gt)                                             # exact integer
    ch = lax.broadcasted_iota(jnp.int32, (C, tk), 0).astype(jnp.float32)
    ln = lax.broadcasted_iota(jnp.int32, (C, tk), 1).astype(jnp.float32)
    pos = ch * float(tk) + ln + 1.0                               # 1-based flat pos

    jac = 1.0 - (gts - cum) / (gts + pos - cum)
    # Previous-position jaccard from the exclusive cumsum (exact arithmetic ->
    # identical to a shifted copy of `jac`, no cross-lane/sublane movement).
    cum_ex = cum - gt
    jac_prev = 1.0 - (gts - cum_ex) / (gts + (pos - 1.0) - cum_ex)
    # Keep this where immediately after: it masks the 0/0 at pos==1 when gts==0.
    jac_prev = jnp.where(pos == 1.0, 0.0, jac_prev)
    grad = jac - jac_prev

    # Padded tail has err = -1e30 -> relu kills its contribution exactly.
    loss = jnp.sum(jnp.maximum(err, 0.0) * grad)
    out_ref[...] = jnp.broadcast_to(loss, out_ref.shape)


def _round_up(x, m):
    return (x + m - 1) // m * m


@jax.jit
def lovasz_hinge_loss(logits, targets):
    """Pallas implementation of LovaszHingeLoss.forward (per_image=True)."""
    B = logits.shape[0]
    x = jnp.reshape(jnp.squeeze(logits, axis=1), (B, -1)).astype(jnp.float32)
    y = jnp.reshape(jnp.squeeze(targets, axis=1), (B, -1)).astype(jnp.float32)
    N = x.shape[1]

    signs = 2.0 * y - 1.0
    errors = 1.0 - x * signs

    # TODO(synk): per-row descending sort (torch.sort) has no clean Mosaic
    # lowering; done as one fused multi-operand lax.sort (key + label payload).
    # Tie ordering may differ from torch.sort for equal errors.
    neg_sorted, gt_sorted = lax.sort((-errors, y), dimension=1, num_keys=1,
                                     is_stable=True)
    errors_sorted = -neg_sorted

    # Chunk near sqrt(N) (multiple of 128, capped) to minimize
    # N*chunk + N^2/chunk MXU work; pad the pixel axis to a multiple of it.
    chunk = _round_up(int(math.ceil(math.sqrt(max(N, 1)))), _LANE)
    chunk = min(chunk, _MAX_CHUNK, _round_up(N, _LANE))
    chunk = max(chunk, _LANE)
    n_pad = _round_up(N, chunk)
    if n_pad > N:
        pad = n_pad - N
        errors_sorted = jnp.concatenate(
            [errors_sorted, jnp.full((B, pad), _NEG_PAD, jnp.float32)], axis=1)
        gt_sorted = jnp.concatenate(
            [gt_sorted, jnp.zeros((B, pad), jnp.float32)], axis=1)
    C = n_pad // chunk
    errors_sorted = errors_sorted.reshape(B, C, chunk)
    # Labels are exactly 0/1 -> bf16 is exact and halves this DMA stream.
    gt_sorted = gt_sorted.reshape(B, C, chunk).astype(jnp.bfloat16)

    # Triangular cumsum operator built once in glue (constant under jit).
    # Constant block index => fetched once per core, never regenerated per image.
    r = lax.broadcasted_iota(jnp.int32, (chunk, chunk), 0)
    c = lax.broadcasted_iota(jnp.int32, (chunk, chunk), 1)
    tri = (r <= c).astype(jnp.bfloat16)

    # Raise the scoped-VMEM limit only when the per-image working set needs it
    # (default scoped limit is 16 MiB on v5e / 32 MiB on v6e & v7x).
    block_in_bytes = C * chunk * (4 + 2)            # err f32 + gt bf16
    est = 2 * 2 * block_in_bytes + 2 * chunk * chunk * 2 + 14 * C * chunk * 4
    cp_kwargs = dict(dimension_semantics=("parallel",))
    if est > 12 * (1 << 20):
        cp_kwargs["vmem_limit_bytes"] = int(min(2 * est, 100 * (1 << 20)))

    per_image = pl.pallas_call(
        _lovasz_kernel,
        out_shape=jax.ShapeDtypeStruct((B, 1, _LANE), jnp.float32),
        grid=(B,),
        in_specs=[
            pl.BlockSpec((1, C, chunk), lambda b: (b, 0, 0)),
            pl.BlockSpec((1, C, chunk), lambda b: (b, 0, 0)),
            pl.BlockSpec((chunk, chunk), lambda b: (0, 0)),
        ],
        out_specs=pl.BlockSpec((1, 1, _LANE), lambda b: (b, 0, 0)),
        compiler_params=pltpu.CompilerParams(**cp_kwargs),
    )(errors_sorted, gt_sorted, tri)
    return jnp.mean(per_image[:, 0, 0])


class LovaszHingeLoss:
    """Mirror of the PyTorch module (no parameters)."""

    def __call__(self, input, target):
        return lovasz_hinge_loss(input, target)


def _reference_loss(logits, targets):
    """Pure-JAX reference of lovasz_hinge(per_image=True) for verification."""
    B = logits.shape[0]
    x = jnp.squeeze(logits, axis=1).reshape(B, -1).astype(jnp.float32)
    y = jnp.squeeze(targets, axis=1).reshape(B, -1).astype(jnp.float32)
    signs = 2.0 * y - 1.0
    errors = 1.0 - x * signs
    perm = jnp.argsort(-errors, axis=1)
    err_s = jnp.take_along_axis(errors, perm, axis=1)
    gt_s = jnp.take_along_axis(y, perm, axis=1)
    gts = jnp.sum(gt_s, axis=1, keepdims=True)
    inter = gts - jnp.cumsum(gt_s, axis=1)
    union = gts + jnp.cumsum(1.0 - gt_s, axis=1)
    jac = 1.0 - inter / union
    grad = jnp.concatenate([jac[:, :1], jac[:, 1:] - jac[:, :-1]], axis=1)
    per_image = jnp.sum(jnp.maximum(err_s, 0.0) * grad, axis=1)
    return jnp.mean(per_image)


if __name__ == "__main__":
    key = jax.random.PRNGKey(0)
    k1, k2 = jax.random.split(key)
    B, Cc, H, W = 2, 1, 16, 16
    logits = jax.random.normal(k1, (B, Cc, H, W), dtype=jnp.float32)
    target = (jax.random.uniform(k2, (B, Cc, H, W)) > 0.5).astype(jnp.float32)

    loss_fn = LovaszHingeLoss()
    loss = loss_fn(logits, target)
    jax.block_until_ready(loss)

    ref = _reference_loss(logits, target)
    np.testing.assert_allclose(np.asarray(loss), np.asarray(ref),
                               rtol=1e-5, atol=1e-5)
    print("KERNEL_OK")
</pallas_src>

<mosaic_0001>
module attributes {stable_mosaic.version = 11 : i64} {
  func.func @_lovasz_kernel(%arg0: i32, %arg1: memref<1x2x128xf32, #tpu.memory_space<vmem>>, %arg2: memref<1x2x128xbf16, #tpu.memory_space<vmem>>, %arg3: memref<128x128xbf16, #tpu.memory_space<vmem>>, %arg4: memref<1x1x128xf32, #tpu.memory_space<vmem>>) attributes {dimension_semantics = [#tpu.dimension_semantics<parallel>], iteration_bounds = array<i64: 2>, scalar_prefetch = 0 : i64, scratch_operands = 0 : i64, tpu.core_type = #tpu.core_type<tc>, window_params = [{transform_indices = @transform_0, window_bounds = array<i64: 1, 2, 128>}, {transform_indices = @transform_1, window_bounds = array<i64: 1, 2, 128>}, {pipeline_mode = #tpu.pipeline_mode<synchronous>, transform_indices = @transform_2, window_bounds = array<i64: 128, 128>}, {transform_indices = @transform_3, window_bounds = array<i64: 1, 1, 128>}]} {
    %c0 = arith.constant 0 : index
    %c0_0 = arith.constant 0 : index
    %c0_1 = arith.constant 0 : index
    %0 = vector.load %arg1[%c0, %c0_0, %c0_1] : memref<1x2x128xf32, #tpu.memory_space<vmem>>, vector<1x2x128xf32>
    %1 = vector.shape_cast %0 : vector<1x2x128xf32> to vector<2x128xf32>
    %c0_2 = arith.constant 0 : index
    %c0_3 = arith.constant 0 : index
    %c0_4 = arith.constant 0 : index
    %2 = vector.load %arg2[%c0_2, %c0_3, %c0_4] : memref<1x2x128xbf16, #tpu.memory_space<vmem>>, vector<1x2x128xbf16>
    %3 = vector.shape_cast %2 : vector<1x2x128xbf16> to vector<2x128xbf16>
    %4 = arith.extf %3 : vector<2x128xbf16> to vector<2x128xf32>
    %c0_5 = arith.constant 0 : index
    %c0_6 = arith.constant 0 : index
    %5 = vector.load %arg3[%c0_5, %c0_6] : memref<128x128xbf16, #tpu.memory_space<vmem>>, vector<128x128xbf16>
    %cst = arith.constant dense<0.000000e+00> : vector<2x128xf32>
    %6 = tpu.matmul %3, %5, %cst {dimension_numbers = #tpu.dot_dimension_numbers<[1], [0], [0], [1], [0, 0, 1, 1], [], []>} : vector<2x128xbf16>, vector<128x128xbf16>, vector<2x128xf32> -> vector<2x128xf32>
    %7 = tpu.iota {dimensions = array<i32: 0>} : vector<2x2xi32>
    %8 = tpu.iota {dimensions = array<i32: 1>} : vector<2x2xi32>
    %9 = arith.cmpi slt, %8, %7 : vector<2x2xi32>
    %10 = arith.extui %9 : vector<2x2xi1> to vector<2x2xi32>
    %11 = arith.sitofp %10 : vector<2x2xi32> to vector<2x2xf32>
    %12 = vector.extract_strided_slice %6 {offsets = [0, 127], sizes = [2, 1], strides = [1, 1]} : vector<2x128xf32> to vector<2x1xf32>
    %cst_7 = arith.constant dense<0.000000e+00> : vector<2x1xf32>
    %13 = tpu.matmul %11, %12, %cst_7 {dimension_numbers = #tpu.dot_dimension_numbers<[1], [0], [0], [1], [0, 0, 1, 1], [], []>} : vector<2x2xf32>, vector<2x1xf32>, vector<2x1xf32> -> vector<2x1xf32>
    %14 = vector.broadcast %13 : vector<2x1xf32> to vector<2x128xf32>
    %15 = arith.addf %6, %14 : vector<2x128xf32>
    %16 = vector.shape_cast %4 : vector<2x128xf32> to vector<1x2x128xf32>
    %cst_8 = arith.constant dense<0.000000e+00> : vector<1xf32>
    %17 = vector.multi_reduction <add>, %16, %cst_8 [1, 2] : vector<1x2x128xf32> to vector<1xf32>
    %18 = vector.shape_cast %17 : vector<1xf32> to vector<1x1x1xf32>
    %19 = vector.extract %18[0, 0, 0] : f32 from vector<1x1x1xf32>
    %20 = tpu.iota {dimensions = array<i32: 0>} : vector<2x128xi32>
    %21 = arith.sitofp %20 : vector<2x128xi32> to vector<2x128xf32>
    %22 = tpu.iota {dimensions = array<i32: 1>} : vector<2x128xi32>
    %23 = arith.sitofp %22 : vector<2x128xi32> to vector<2x128xf32>
    %cst_9 = arith.constant 1.280000e+02 : f32
    %24 = vector.broadcast %cst_9 : f32 to vector<2x128xf32>
    %25 = arith.mulf %21, %24 : vector<2x128xf32>
    %26 = arith.addf %25, %23 : vector<2x128xf32>
    %cst_10 = arith.constant 1.000000e+00 : f32
    %27 = vector.broadcast %cst_10 : f32 to vector<2x128xf32>
    %28 = arith.addf %26, %27 : vector<2x128xf32>
    %29 = vector.broadcast %19 : f32 to vector<2x128xf32>
    %30 = arith.subf %29, %15 : vector<2x128xf32>
    %31 = vector.broadcast %19 : f32 to vector<2x128xf32>
    %32 = arith.addf %31, %28 : vector<2x128xf32>
    %33 = arith.subf %32, %15 : vector<2x128xf32>
    %34 = arith.divf %30, %33 : vector<2x128xf32>
    %cst_11 = arith.constant 1.000000e+00 : f32
    %35 = vector.broadcast %cst_11 : f32 to vector<2x128xf32>
    %36 = arith.subf %35, %34 : vector<2x128xf32>
    %37 = arith.subf %15, %4 : vector<2x128xf32>
    %38 = vector.broadcast %19 : f32 to vector<2x128xf32>
    %39 = arith.subf %38, %37 : vector<2x128xf32>
    %cst_12 = arith.constant 1.000000e+00 : f32
    %40 = vector.broadcast %cst_12 : f32 to vector<2x128xf32>
    %41 = arith.subf %28, %40 : vector<2x128xf32>
    %42 = vector.broadcast %19 : f32 to vector<2x128xf32>
    %43 = arith.addf %42, %41 : vector<2x128xf32>
    %44 = arith.subf %43, %37 : vector<2x128xf32>
    %45 = arith.divf %39, %44 : vector<2x128xf32>
    %cst_13 = arith.constant 1.000000e+00 : f32
    %46 = vector.broadcast %cst_13 : f32 to vector<2x128xf32>
    %47 = arith.subf %46, %45 : vector<2x128xf32>
    %cst_14 = arith.constant 1.000000e+00 : f32
    %48 = vector.broadcast %cst_14 : f32 to vector<2x128xf32>
    %49 = arith.cmpf oeq, %28, %48 : vector<2x128xf32>
    %cst_15 = arith.constant 0.000000e+00 : f32
    %50 = vector.broadcast %cst_15 : f32 to vector<2x128xf32>
    %51 = arith.select %49, %50, %47 : vector<2x128xi1>, vector<2x128xf32>
    %52 = arith.subf %36, %51 : vector<2x128xf32>
    %cst_16 = arith.constant 0.000000e+00 : f32
    %53 = vector.broadcast %cst_16 : f32 to vector<2x128xf32>
    %54 = arith.maximumf %1, %53 : vector<2x128xf32>
    %55 = arith.mulf %54, %52 : vector<2x128xf32>
    %56 = vector.shape_cast %55 : vector<2x128xf32> to vector<1x2x128xf32>
    %cst_17 = arith.constant dense<0.000000e+00> : vector<1xf32>
    %57 = vector.multi_reduction <add>, %56, %cst_17 [1, 2] : vector<1x2x128xf32> to vector<1xf32>
    %58 = vector.shape_cast %57 : vector<1xf32> to vector<1x1x1xf32>
    %59 = vector.extract %58[0, 0, 0] : f32 from vector<1x1x1xf32>
    %60 = vector.broadcast %59 : f32 to vector<1x1x128xf32>
    %c0_18 = arith.constant 0 : index
    %c0_19 = arith.constant 0 : index
    %c0_20 = arith.constant 0 : index
    %61 = vector.load %arg4[%c0_18, %c0_19, %c0_20] : memref<1x1x128xf32, #tpu.memory_space<vmem>>, vector<1x1x128xf32>
    tpu.vector_store %arg4[%c0_18, %c0_19, %c0_20], %60 {strides = array<i32>} : memref<1x1x128xf32, #tpu.memory_space<vmem>>, vector<1x1x128xf32>,
    return
  }
  func.func @transform_0(%arg0: i32) -> (i32, i32, i32) {
    %c0_i32 = arith.constant 0 : i32
    %c0_i32_0 = arith.constant 0 : i32
    %c0_i32_1 = arith.constant 0 : i32
    return %arg0, %c0_i32, %c0_i32_0 : i32, i32, i32
  }
  func.func @transform_1(%arg0: i32) -> (i32, i32, i32) {
    %c0_i32 = arith.constant 0 : i32
    %c0_i32_0 = arith.constant 0 : i32
    %c0_i32_1 = arith.constant 0 : i32
    return %arg0, %c0_i32, %c0_i32_0 : i32, i32, i32
  }
  func.func @transform_2(%arg0: i32) -> (i32, i32) {
    %c0_i32 = arith.constant 0 : i32
    %c0_i32_0 = arith.constant 0 : i32
    %c0_i32_1 = arith.constant 0 : i32
    return %c0_i32, %c0_i32_0 : i32, i32
  }
  func.func @transform_3(%arg0: i32) -> (i32, i32, i32) {
    %c0_i32 = arith.constant 0 : i32
    %c0_i32_0 = arith.constant 0 : i32
    %c0_i32_1 = arith.constant 0 : i32
    return %arg0, %c0_i32, %c0_i32_0 : i32, i32, i32
  }
}

</mosaic_0001>

<bundles_post_ra>
// kernel: squeeze.4
= control target key start
LH: loop header
LB: loop body
LE: loop exit
PB: predicated region body
PF: predicated region fallthrough
CT: control target
= control target key end

     0   :  { %2 = vsyncpa [#allocation1], 0  ;;  %s165_s8 = smov [#allocation0]   ;;  %s199_s0 = inlined_call_operand.hbm [shape: f32[2,1,16,16], index: 0, kind: input, shape index: {}]   ;;  %s200_s1 = inlined_call_operand.vmem [shape: f32[2,256], index: 1, kind: output, shape index: {}]  }
   0x1   :  { %s6_s0 = sshll.u32 %s199_s0, 4  ;;  %s8_s9 = sshll.u32 %s165_s8, 4  ;;  %s7_s0 = int_to_ptr.hbm [resolvable:$true] %s6_s0  ;;  %s9_s9 = int_to_ptr.vmem [resolvable:$true] %s8_s9 }
   0x2   :  { %11 = dma.hbm_to_vmem [thread:$0]  %s7_s0, 512, %s9_s9, [#allocation1]  }
   0x3   :  { %163 = dma.done.wait [#allocation1], 512  }
   0x4   :  { %164 = vsyncadd [#allocation1], 4294966784  ;;  %s20_s10 = smov 3  ;;  %s23_s11 = smov 12  ;;  %vm25_vm0 = vcmask 1043458   ;;  %vm15_vm1 = vcmask 130048  }
   0x5   :  { %s48_s12 = smov 3  ;;  %s51_s13 = smov 12  ;;  %v21_v0 = vld [vmem:[#allocation0 + $0x7] ss:$16 sm:%s20_s10]   ;;  %v24_v1 = vld [vmem:[#allocation0 - $0x11] ss:$16 sm:%s23_s11]  }
   0x6   :  { %s34_s14 = smov 3  ;;  %v49_v2 = vld [vmem:[#allocation0 + $0x5] ss:$16 sm:%s48_s12]   ;;  %v26_v3 = vsel %vm25_vm0, %v24_v1, %v21_v0  ;;  %v52_v4 = vld [vmem:[#allocation0 - $0x13] ss:$16 sm:%s51_s13]   ;;  %s37_s15 = smov 12 }
   0x7   :  { %s166_s16 = smov 112   ;;  %v54_v5 = vsel %vm25_vm0, %v52_v4, %v49_v2  ;;  %s62_s17 = smov 3  ;;  %v35_v6 = vld [vmem:[#allocation0 + $0x6] ss:$16 sm:%s34_s14]   ;;  %v38_v7 = vld [vmem:[#allocation0 - $0x12] ss:$16 sm:%s37_s15]  }
   0x8   :  { %27 = vrot.lane.b32.xlu0 %v26_v3, %s166_s16  ;;  %s65_s18 = smov 12  ;;  %s167_s19 = smov 80   ;;  %v63_v9 = vld [vmem:[#allocation0 + $0x4] ss:$16 sm:%s62_s17]   ;;  %v40_v13 = vsel %vm25_vm0, %v38_v7, %v35_v6  ;;  %vm29_vm2 = vcmask 1048448   ;;  %vm43_vm3 = vcmask 917248  }
   0x9   :  { %55 = vrot.lane.b32.xlu1 %v54_v5, %s167_s19  ;;  %s76_s20 = smov 3  ;;  %s79_s21 = smov 12  ;;  %v66_v10 = vld [vmem:[#allocation0 - $0x14] ss:$16 sm:%s65_s18]   ;;  %vm57_vm4 = vcmask 786048   ;;  %vm71_vm5 = vcmask 654848  }
   0xa   :  { %v77_v8 = vld [vmem:[#allocation0 + $0x3] ss:$16 sm:%s76_s20]   ;;  %v80_v11 = vld [vmem:[#allocation0 - $0x15] ss:$16 sm:%s79_s21]   ;;  %s90_s22 = smov 3  ;;  %s93_s23 = smov 12  ;;  %v68_v14 = vsel %vm25_vm0, %v66_v10, %v63_v9 }
   0xb   :  { %v82_v12 = vsel %vm25_vm0, %v80_v11, %v77_v8  ;;  %s168_s24 = smov 48   ;;  %s104_s25 = smov 3  ;;  %v91_v15 = vld [vmem:[#allocation0 + $0x2] ss:$16 sm:%s90_s22]   ;;  %v94_v16 = vld [vmem:[#allocation0 - $0x16] ss:$16 sm:%s93_s23]  }
   0xc   :  { %83 = vrot.lane.b32.xlu2 %v82_v12, %s168_s24  ;;  %s107_s26 = smov 12  ;;  %s169_s27 = smov 96   ;;  %v105_v17 = vld [vmem:[#allocation0 + $0x1] ss:$16 sm:%s104_s25]   ;;  %v96_v19 = vsel %vm25_vm0, %v94_v16, %v91_v15  ;;  %vm85_vm6 = vcmask 523648   ;;  %vm99_vm7 = vcmask 392448  }
   0xd   :  { %s170_s28 = smov 64   ;;  %v108_v18 = vld [vmem:[#allocation0 - $0x17] ss:$16 sm:%s107_s26]   ;;  %s171_s29 = smov 32   ;;  %vm113_vm8 = vcmask 261248  }
   0xe   :  { %v110_v20 = vsel %vm25_vm0, %v108_v18, %v105_v17  ;;  %s172_s30 = smov 16   ;;  %v14_v21 = vld [vmem:[#allocation0] ss:$8 sm:$0xf]  }
   0xf   :  { %16 = vst.msk [vmem:[#allocation2] ss:$8 sm:$0x3] %vm15_vm1, %v14_v21  }
  0x10   :  { %41 = vrot.lane.b32.xlu0 %v40_v13, %s169_s27  ;;  %18 = vst.msk [vmem:[#allocation2 - $0xf] ss:$8 sm:$0xc] %vm15_vm1, %v14_v21  }
  0x11   :  { %69 = vrot.lane.b32.xlu1 %v68_v14, %s170_s28 }
  0x14   :  { %97 = vrot.lane.b32.xlu2 %v96_v19, %s171_s29 }
  0x18   :  { %111 = vrot.lane.b32.xlu0 %v110_v20, %s172_s30 }
  0x66   :  { %v84_v22 = vpop.permute.xlu2 %83  }
  0x6e   :  { %v98_v23 = vpop.permute.xlu2 %97  }
  0x7a   :  { %v28_v24 = vpop.permute.xlu0 %27  }
  0x7b   :  { %30 = vst.msk [vmem:[#allocation2] sm:$0x3] %vm29_vm2, %v28_v24   ;;  %v56_v25 = vpop.permute.xlu1 %55  }
  0x7c   :  { %32 = vst.msk [vmem:[#allocation2 + $0x6] sm:$0xc] %vm29_vm2, %v28_v24  }
  0x82   :  { %v42_v26 = vpop.permute.xlu0 %41  }
  0x83   :  { %44 = vst.msk [vmem:[#allocation2] sm:$0x3] %vm43_vm3, %v42_v26   ;;  %v70_v27 = vpop.permute.xlu1 %69  }
  0x84   :  { %46 = vst.msk [vmem:[#allocation2 + $0x6] sm:$0xc] %vm43_vm3, %v42_v26  }
  0x85   :  { %58 = vst.msk [vmem:[#allocation2] sm:$0x3] %vm57_vm4, %v56_v25  }
  0x86   :  { %60 = vst.msk [vmem:[#allocation2 + $0x6] sm:$0xc] %vm57_vm4, %v56_v25  }
  0x87   :  { %72 = vst.msk [vmem:[#allocation2] sm:$0x3] %vm71_vm5, %v70_v27  }
  0x88   :  { %74 = vst.msk [vmem:[#allocation2 + $0x6] sm:$0xc] %vm71_vm5, %v70_v27  }
  0x89   :  { %86 = vst.msk [vmem:[#allocation2] sm:$0x3] %vm85_vm6, %v84_v22  }
  0x8a   :  { %88 = vst.msk [vmem:[#allocation2 + $0x6] sm:$0xc] %vm85_vm6, %v84_v22   ;;  %v112_v28 = vpop.permute.xlu0 %111  }
  0x8b   :  { %100 = vst.msk [vmem:[#allocation2] sm:$0x3] %vm99_vm7, %v98_v23  }
  0x8c   :  { %102 = vst.msk [vmem:[#allocation2 + $0x6] sm:$0xc] %vm99_vm7, %v98_v23  }
  0x8d   :  { %114 = vst.msk [vmem:[#allocation2] sm:$0x3] %vm113_vm8, %v112_v28  }
  0x8e   :  { %116 = vst.msk [vmem:[#allocation2 + $0x6] sm:$0xc] %vm113_vm8, %v112_v28  }
  0x94   :  { %v119_v29 = vld [vmem:[#allocation2] sm:$0x3] }
  0x95   :  { %122 = vst [vmem:[%s200_s1] sm:$0x3] %v119_v29  ;;  %v124_v30 = vld [vmem:[#allocation2 + $0x8] sm:$0x3] }
  0x96   :  { %130 = vst [vmem:[%s200_s1 + $0x2] sm:$0x3] %v124_v30 }
  0x97   :  { %129 = vsyncpa [#allocation1], 1 }

// kernel: squeeze.3
= control target key start
LH: loop header
LB: loop body
LE: loop exit
PB: predicated region body
PF: predicated region fallthrough
CT: control target
= control target key end

     0   :  { %s8_s6 = smov 3  ;;  %s11_s7 = smov 12  ;;  %vm13_vm0 = vcmask 1043458   ;;  %vm3_vm1 = vcmask 130048   ;;  %vm17_vm2 = vcmask 1048448   ;;  %vm31_vm3 = vcmask 917248   ;;  %s214_s0 = inlined_call_operand.vmem [shape: f32[2,1,16,16], index: 0, kind: input, shape index: {}]   ;;  %s215_s1 = inlined_call_operand.vmem [shape: f32[2,256], index: 1, kind: output, shape index: {}]  }
   0x1   :  { %v117_v0 = vld [vmem:[%s214_s0 + $0x7] ss:$16 sm:%s8_s6]   ;;  %v118_v1 = vld [vmem:[%s214_s0 - $0x11] ss:$16 sm:%s11_s7]   ;;  %s36_s12 = smov 3  ;;  %s39_s15 = smov 12 }
   0x2   :  { %v14_v2 = vsel %vm13_vm0, %v118_v1, %v117_v0  ;;  %v121_v3 = vld [vmem:[%s214_s0 + $0x5] ss:$16 sm:%s36_s12]   ;;  %s139_s16 = smov 112   ;;  %v122_v4 = vld [vmem:[%s214_s0 - $0x13] ss:$16 sm:%s39_s15]   ;;  %s22_s19 = smov 3 }
   0x3   :  { %15 = vrot.lane.b32.xlu0 %v14_v2, %s139_s16  ;;  %s25_s20 = smov 12  ;;  %v42_v5 = vsel %vm13_vm0, %v122_v4, %v121_v3  ;;  %v119_v6 = vld [vmem:[%s214_s0 + $0x6] ss:$16 sm:%s22_s19]   ;;  %s50_s23 = smov 3  ;;  %vm45_vm4 = vcmask 786048   ;;  %vm59_vm5 = vcmask 654848  }
   0x4   :  { %s140_s24 = smov 80   ;;  %v120_v7 = vld [vmem:[%s214_s0 - $0x12] ss:$16 sm:%s25_s20]   ;;  %s53_s27 = smov 12  ;;  %v123_v8 = vld [vmem:[%s214_s0 + $0x4] ss:$16 sm:%s50_s23]  }
   0x5   :  { %43 = vrot.lane.b32.xlu1 %v42_v5, %s140_s24  ;;  %v124_v9 = vld [vmem:[%s214_s0 - $0x14] ss:$16 sm:%s53_s27]   ;;  %s92_s3 = smov 3  ;;  %s64_s4 = smov 3  ;;  %v28_v10 = vsel %vm13_vm0, %v120_v7, %v119_v6  ;;  %vm73_vm6 = vcmask 523648   ;;  %vm87_vm7 = vcmask 392448  }
   0x6   :  { %v125_v11 = vld [vmem:[%s214_s0 + $0x3] ss:$16 sm:%s64_s4]   ;;  %s67_s7 = smov 12  ;;  %s95_s8 = smov 12  ;;  %v56_v13 = vsel %vm13_vm0, %v124_v9, %v123_v8  ;;  %v129_v15 = vld [vmem:[%s214_s0 + $0x1] ss:$16 sm:%s92_s3]  }
   0x7   :  { %v126_v12 = vld [vmem:[%s214_s0 - $0x15] ss:$16 sm:%s67_s7]   ;;  %s78_s11 = smov 3  ;;  %s81_s12 = smov 12  ;;  %v130_v16 = vld [vmem:[%s214_s0 - $0x17] ss:$16 sm:%s95_s8]  }
   0x8   :  { %v70_v14 = vsel %vm13_vm0, %v126_v12, %v125_v11  ;;  %s141_s13 = smov 96   ;;  %s142_s16 = smov 48   ;;  %v127_v17 = vld [vmem:[%s214_s0 + $0x2] ss:$16 sm:%s78_s11]   ;;  %v128_v18 = vld [vmem:[%s214_s0 - $0x16] ss:$16 sm:%s81_s12]   ;;  %v98_v19 = vsel %vm13_vm0, %v130_v16, %v129_v15 }
   0x9   :  { %71 = vrot.lane.b32.xlu2 %v70_v14, %s142_s16  ;;  %s143_s21 = smov 64   ;;  %v84_v20 = vsel %vm13_vm0, %v128_v18, %v127_v17  ;;  %s144_s24 = smov 16   ;;  %v2_v21 = vld [vmem:[%s214_s0] ss:$8 sm:$0xf]   ;;  %vm101_vm8 = vcmask 261248  }
   0xa   :  { %s145_s25 = smov 32   ;;  %4 = vst.msk [vmem:[#allocation0] ss:$8 sm:$0x3] %vm3_vm1, %v2_v21  }
   0xb   :  { %29 = vrot.lane.b32.xlu0 %v28_v10, %s141_s13  ;;  %6 = vst.msk [vmem:[#allocation0 - $0xf] ss:$8 sm:$0xc] %vm3_vm1, %v2_v21  }
   0xd   :  { %57 = vrot.lane.b32.xlu1 %v56_v13, %s143_s21 }
  0x11   :  { %85 = vrot.lane.b32.xlu2 %v84_v20, %s145_s25 }
  0x13   :  { %99 = vrot.lane.b32.xlu0 %v98_v19, %s144_s24 }
  0x63   :  { %v72_v22 = vpop.permute.xlu2 %71  }
  0x6b   :  { %v86_v23 = vpop.permute.xlu2 %85  }
  0x75   :  { %v16_v24 = vpop.permute.xlu0 %15  }
  0x76   :  { %18 = vst.msk [vmem:[#allocation0] sm:$0x3] %vm17_vm2, %v16_v24  }
  0x77   :  { %20 = vst.msk [vmem:[#allocation0 + $0x6] sm:$0xc] %vm17_vm2, %v16_v24   ;;  %v44_v25 = vpop.permute.xlu1 %43  }
  0x7d   :  { %v30_v26 = vpop.permute.xlu0 %29  }
  0x7e   :  { %32 = vst.msk [vmem:[#allocation0] sm:$0x3] %vm31_vm3, %v30_v26  }
  0x7f   :  { %34 = vst.msk [vmem:[#allocation0 + $0x6] sm:$0xc] %vm31_vm3, %v30_v26   ;;  %v58_v27 = vpop.permute.xlu1 %57  }
  0x80   :  { %46 = vst.msk [vmem:[#allocation0] sm:$0x3] %vm45_vm4, %v44_v25  }
  0x81   :  { %48 = vst.msk [vmem:[#allocation0 + $0x6] sm:$0xc] %vm45_vm4, %v44_v25  }
  0x82   :  { %60 = vst.msk [vmem:[#allocation0] sm:$0x3] %vm59_vm5, %v58_v27  }
  0x83   :  { %62 = vst.msk [vmem:[#allocation0 + $0x6] sm:$0xc] %vm59_vm5, %v58_v27  }
  0x84   :  { %74 = vst.msk [vmem:[#allocation0] sm:$0x3] %vm73_vm6, %v72_v22  }
  0x85   :  { %76 = vst.msk [vmem:[#allocation0 + $0x6] sm:$0xc] %vm73_vm6, %v72_v22   ;;  %v100_v28 = vpop.permute.xlu0 %99  }
  0x86   :  { %88 = vst.msk [vmem:[#allocation0] sm:$0x3] %vm87_vm7, %v86_v23  }
  0x87   :  { %90 = vst.msk [vmem:[#allocation0 + $0x6] sm:$0xc] %vm87_vm7, %v86_v23  }
  0x88   :  { %102 = vst.msk [vmem:[#allocation0] sm:$0x3] %vm101_vm8, %v100_v28  }
  0x89   :  { %104 = vst.msk [vmem:[#allocation0 + $0x6] sm:$0xc] %vm101_vm8, %v100_v28  }
  0x8f   :  { %v107_v29 = vld [vmem:[#allocation0] sm:$0x3] }
  0x90   :  { %110 = vst [vmem:[%s215_s1] sm:$0x3] %v107_v29  ;;  %v112_v30 = vld [vmem:[#allocation0 + $0x8] sm:$0x3] }
  0x91   :  { %131 = vst [vmem:[%s215_s1 + $0x2] sm:$0x3] %v112_v30 }

// kernel: neg.3
= control target key start
LH: loop header
LB: loop body
LE: loop exit
PB: predicated region body
PF: predicated region fallthrough
CT: control target
= control target key end

     0   :  { %s40_s0 = inlined_call_operand.vmem [shape: f32[2,256], index: 0, kind: input, shape index: {}]   ;;  %s41_s1 = inlined_call_operand.vmem [shape: f32[2,256], index: 1, kind: output, shape index: {}]  }
   0x1   :  { %v2_v0 = vld [vmem:[%s40_s0] sm:$0x3]  ;;  %v16_v1 = vld [vmem:[%s40_s0 + $0x2] sm:$0x3] }
   0x2   :  { %v5_v2 = vxor.u32 2147483648, %v2_v0  ;;  %v12_v3 = vxor.u32 2147483648, %v16_v1 }
   0x4   :  { %7 = vst [vmem:[%s41_s1] sm:$0x3] %v5_v2 }
   0x5   :  { %17 = vst [vmem:[%s41_s1 + $0x2] sm:$0x3] %v12_v3 }

// kernel: lovasz_hinge_loss.1
= control target key start
LH: loop header
LB: loop body
LE: loop exit
PB: predicated region body
PF: predicated region fallthrough
CT: control target
= control target key end

     0   :  { %s534_s12 = smov 0   ;;  %s586_s0 = inlined_call_operand.vmem [shape: f32[2,2,128], index: 0, kind: input, shape index: {}]   ;;  %s587_s1 = inlined_call_operand.vmem [shape: bf16[2,2,128], index: 1, kind: input, shape index: {}]   ;;  %s588_s2 = inlined_call_operand.vmem [shape: bf16[128,128], index: 2, kind: input, shape index: {}]   ;;  %s589_s3 = inlined_call_operand.vmem [shape: f32[2,1,128], index: 3, kind: output, shape index: {}]  }
   0x1 LB: > { %s430_s13 = sadd.s32 4294967295, %s509_s12   ;;  %p434_p0 = scmp.ge.s32.totalorder %s509_s12, 1  ;;  %s509_s12 = sphi %s534_s12, %s13_s12  }
   0x2   : > { %p144_p1 = scmp.lt.s32.totalorder %s509_s12, 3 }
   0x4   : > { %p145_p2 = pnand %p434_p0, %p144_p1 }
   0x5   : > { %p168_p3 = scmp.lt.s32.totalorder (!%p145_p2), %s430_s13, 1  ;;  %s511_s6 = smov (!%p145_p2), 1  }
   0x6   : > { %148 = sbr.rel (%p145_p2) target bundleno = 739 (0x2e3), region = 32 }
   0xb   : > { %v481_v0 = vld [vmem:[%s588_s2 + $0x38] sm:$0xff]  ;;  %v480_v1 = vld [vmem:[%s588_s2 + $0x30] sm:$0xff]  ;;  %v479_v2 = vld [vmem:[%s588_s2 + $0x28] sm:$0xff]  ;;  %s591_s13 = smov (!%p168_p3, %s430_s13), 1  ;;  %v258_v11 = vlaneseq  ;;  %vm272_vm0 = vcmask 1041408   ;;  %v512_v18 = vmov 0  }
   0xc   : > { %245 = vmatpush.bf16.msra.mxu0 %v481_v0  ;;  %v478_v3 = vld [vmem:[%s588_s2 + $0x20] sm:$0xff]  ;;  %v477_v4 = vld [vmem:[%s588_s2 + $0x18] sm:$0xff]  ;;  %v476_v5 = vld [vmem:[%s588_s2 + $0x10] sm:$0xff]  ;;  %s174_s5 = scalar_lea.vmem %s587_s1, %s591_s13  ;;  %497 = vset.pattern.permute.xlu1 %v512_v18  ;;  %v513_v21 = vmov 0.0   ;;  %vm268_vm2 = vcmask 15360   ;;  %s435_s8 = sshll.u32 %s591_s13, 1 }
   0xd   : > { %v475_v6 = vld [vmem:[%s588_s2 + $0x8] sm:$0xff]  ;;  %v474_v7 = vld [vmem:[%s588_s2] sm:$0xff]  ;;  %v259_v13 = vshrl.u32 %v258_v11, 7  ;;  %v261_v14 = vand.u32 127, %v258_v11  ;;  %498 = vset.pattern.permute.xlu0 %v512_v18  ;;  %s171_s11 = scalar_lea.vmem %s586_s0, %s435_s8  ;;  %s177_s16 = scalar_lea.vmem %s589_s3, %s591_s13 }
   0xe   : > { %v179_v8 = vld [vmem:[%s174_s5] sm:$0x1] }
   0xf   : > { %v180_v12 = vunpack.c.l.bf16 %v179_v8  ;;  %v311_v15 = vcvt.s32.f32 %v259_v13  ;;  %v312_v16 = vcvt.s32.f32 %v261_v14  ;;  %vm262_vm1 = vcmp.lt.s32.totalorder %v261_v14, %v259_v13 }
  0x10   : > { %246 = vmatpush.bf16.msra.mxu0 %v480_v1  ;;  %v468_v22 = vsel %vm262_vm1, 1.0, %v513_v21  ;;  %v178_v1 = vld [vmem:[%s171_s11] sm:$0x3] }
  0x11   : > { %v301_v17 = vsel %vm272_vm0, %v180_v12, 0.0  ;;  %v313_v19 = vmul.f32 128.0, %v311_v15 }
  0x13   : > { %v314_v20 = vadd.f32 %v313_v19, %v312_v16 }
  0x14   : > { %247 = vmatpush.bf16.msra.mxu0 %v479_v2 }
  0x15   : > { %v315_v32 = vadd.f32 1.0, %v314_v20 }
  0x17   : > { %v471_v34 = vadd.f32 -1.0, %v315_v32  ;;  %vm357_vm11 = vcmp.eq.f32.partialorder %v315_v32, 1.0 }
  0x18   : > { %248 = vmatpush.bf16.msra.mxu0 %v478_v3 }
  0x1c   : > { %249 = vmatpush.bf16.msra.mxu0 %v477_v4 }
  0x20   : > { %250 = vmatpush.bf16.msra.mxu0 %v476_v5  ;;  %v360_v5 = vmax.f32 %v178_v1, 0.0 }
  0x24   : > { %251 = vmatpush.bf16.msra.mxu0 %v475_v6 }
  0x28   : > { %252 = vmatpush.bf16.msra.mxu0 %v474_v7 }
  0x2b   : > { %253 = vmatmul.bf16.vlgmr.msra.gmra.mxu0 %v179_v8 }
  0xa8   : > { %v254_v9 = vpop.f32.mrf.mxu0 }
  0xa9   : > { %266 = vrot.lane.b32.xlu0 %v254_v9, %s511_s6 }
  0xb0   : > { %v256_v10 = vpop.f32.mrf.mxu0 }
  0xd3   : > { %302 = vadd.xlane.f32.xlu0 %v301_v17 }
 0x11b   : > { %v267_v23 = vpop.permute.xlu0 %266 }
 0x11c   : > { %469 = vmatpush.msk.msra.mxu1 %vm272_vm0, %v267_v23 }
 0x11d   : > { %470 = vmatmul.msk.f32.vlgmr.msra.gmra.mxu1 %vm268_vm2, %v468_v22 }
 0x146   : > { %v303_v24 = vpop.xlane.xlu0 %302 }
 0x147   : > { %v304_v25 = vrot.slane %v303_v24, 4 }
 0x149   : > { %v305_v26 = vadd.f32 %v304_v25, %v303_v24 }
 0x14b   : > { %v306_v27 = vrot.slane %v305_v26, 2 }
 0x14d   : > { %v307_v28 = vadd.f32 %v306_v27, %v305_v26 }
 0x14f   : > { %v308_v29 = vrot.slane %v307_v28, 1 }
 0x151   : > { %v309_v30 = vadd.f32 %v308_v29, %v307_v28 }
 0x153   : > { %482 = vpush %v309_v30 }
 0x184   : > { %s483_s7 = spop %482 }
 0x185   : > { %v316_v33 = vstv %s483_s7 }
 0x186   : > { %v318_v36 = vadd.f32 %v316_v33, %v315_v32  ;;  %v339_v38 = vadd.f32 %v471_v34, %v316_v33 }
 0x19a   : > { %v292_v31 = vpop.f32.mrf.mxu1 }
 0x19b   : > { %297 = vperm.xlu1 %497, %v292_v31  }
 0x20d   : > { %v298_v35 = vpop.permute.xlu1 %297 }
 0x20e   : > { %v300_v37 = vadd.f32 %v298_v35, %v254_v9 }
 0x210   : > { %v319_v39 = vsub.f32 %v318_v36, %v300_v37  ;;  %v336_v40 = vsub.f32 %v300_v37, %v180_v12  ;;  %v317_v58 = vsub.f32 %v316_v33, %v300_v37 }
 0x212   : > { %499 = vrcp.f32 %v319_v39  ;;  %v340_v41 = vsub.f32 %v339_v38, %v336_v40  ;;  %v331_v47 = vand.u32 2147483648, %v319_v39  ;;  %v329_v49 = vand.u32 2147483647, %v319_v39 }
 0x213   : > { %vm325_vm4 = vweird.f32 %v319_v39  ;;  %v337_v61 = vsub.f32 %v316_v33, %v336_v40 }
 0x214   : > { %501 = vrcp.f32 %v340_v41  ;;  %v352_v51 = vand.u32 2147483648, %v340_v41  ;;  %v350_v54 = vand.u32 2147483647, %v340_v41  ;;  %v332_v55 = vor.u32 1.1754944e-38, %v331_v47 }
 0x215   : > { %vm330_vm7 = vcmp.eq.f32.partialorder %v329_v49, 8.507059e+37  ;;  %vm346_vm8 = vweird.f32 %v340_v41 }
 0x216   : > { %v353_v60 = vor.u32 1.1754944e-38, %v352_v51  ;;  %vm351_vm10 = vcmp.eq.f32.partialorder %v350_v54, 8.507059e+37 }
 0x218   : > { %v500_v42 = vpop.eup %499 }
 0x219   : > { %v321_v43 = vmul.f32 %v500_v42, %v319_v39  ;;  %vm326_vm3 = vweird.f32 %v500_v42 }
 0x21a   : > { %v502_v44 = vpop.eup %501  ;;  %vm327_vm6 = vmor %vm325_vm4, %vm326_vm3 }
 0x21b   : > { %v322_v45 = vsub.f32 1.0, %v321_v43  ;;  %v342_v46 = vmul.f32 %v502_v44, %v340_v41  ;;  %vm347_vm5 = vweird.f32 %v502_v44 }
 0x21c   : > { %vm348_vm9 = vmor %vm346_vm8, %vm347_vm5 }
 0x21d   : > { %v323_v48 = vmul.f32 %v500_v42, %v322_v45  ;;  %v343_v50 = vsub.f32 1.0, %v342_v46 }
 0x21f   : > { %v324_v52 = vadd.f32 %v500_v42, %v323_v48  ;;  %v344_v53 = vmul.f32 %v502_v44, %v343_v50 }
 0x221   : > { %v328_v56 = vsel %vm327_vm6, %v500_v42, %v324_v52  ;;  %v345_v57 = vadd.f32 %v502_v44, %v344_v53 }
 0x222   : > { %v333_v59 = vsel %vm330_vm7, %v332_v55, %v328_v56 }
 0x223   : > { %v349_v62 = vsel %vm348_vm9, %v502_v44, %v345_v57  ;;  %v334_v63 = vmul.f32 %v333_v59, %v317_v58 }
 0x224   : > { %v354_v0 = vsel %vm351_vm10, %v353_v60, %v349_v62 }
 0x225   : > { %v355_v2 = vmul.f32 %v354_v0, %v337_v61  ;;  %v335_v4 = vsub.f32 1.0, %v334_v63 }
 0x227   : > { %v356_v3 = vsub.f32 1.0, %v355_v2 }
 0x229   : > { %v358_v6 = vsel %vm357_vm11, 0.0, %v356_v3 }
 0x22a   : > { %v359_v7 = vsub.f32 %v335_v4, %v358_v6 }
 0x22c   : > { %v361_v8 = vmul.f32 %v360_v5, %v359_v7 }
 0x22e   : > { %v362_v9 = vsel %vm272_vm0, %v361_v8, 0.0 }
 0x22f   : > { %363 = vadd.xlane.f32.xlu1 %v362_v9 }
 0x2a2   : > { %v364_v10 = vpop.xlane.xlu1 %363 }
 0x2a3   : > { %v365_v11 = vrot.slane %v364_v10, 4 }
 0x2a5   : > { %v366_v12 = vadd.f32 %v365_v11, %v364_v10 }
 0x2a7   : > { %v367_v13 = vrot.slane %v366_v12, 2 }
 0x2a9   : > { %v368_v14 = vadd.f32 %v367_v13, %v366_v12 }
 0x2ab   : > { %v369_v15 = vrot.slane %v368_v14, 1 }
 0x2ad   : > { %v370_v16 = vadd.f32 %v369_v15, %v368_v14 }
 0x2af   : > { %484 = vpush %v370_v16 }
 0x2e0   : > { %s485_s17 = spop %484 }
 0x2e1   : > { %v372_v17 = vstv %s485_s17 }
 0x2e2   : > { %373 = vst [vmem:[%s177_s16] sm:$0x1] %v372_v17 }
 0x2e3 PF: > { %s13_s12 = sadd.s32 1, %s509_s12  }
 0x2e4   : > { %p10_p4 = scmp.ge.s32.totalorder %s13_s12, 4  }
 0x2e6   :  { %12 = sbr.rel (!%p10_p4) target bundleno = 1 (0x1), region = 65 }

</bundles_post_ra>
